<compile_context>
chip_gen: v6e
topology: v6e:2x2x1
jax: 0.10.0
libtpu: 0.0.40
codegen_flags: <defaults>
</compile_context>

<pallas_src>
import functools

import jax
import jax.numpy as jnp
from jax.experimental import pallas as pl
from jax.experimental.pallas import tpu as pltpu

LANE = 128      # TPU lane width; an f32 vreg is (8, 128)
SUBLANE = 8


def _round_up(n, m):
    return ((n + m - 1) // m) * m


def _layer_row_offsets(layer_dims):
    """Row offset of each layer's block inside the packed (rows, 128) slab.

    Layer 1 block:  round_up(input_dim + 1, 8) rows (W1 rows, then the b1 row).
    Layers 2..L:    exactly 128 rows; W_i occupies K-rows 0..din-1 and b_i sits
                    at K-row din.  The previous layer's activation lane `din`
                    is always exactly zero, so the embedded bias row contributes
                    nothing to the matmul; the bias is added explicitly instead.
    """
    offs, r = [], 0
    for li, din in enumerate(layer_dims[:-1]):
        offs.append(r)
        r += _round_up(din + 1, SUBLANE) if li == 0 else LANE
    return offs, r


def pack_params(params, layer_dims, dtype=jnp.float32):
    """Pack all weights + biases into a single zero-padded (rows, 128) slab.

    NOTE: params[f"w{i}"] must already be (din, dout), i.e. the transpose of a
    torch nn.Linear .weight (which is (dout, din)); params[f"b{i}"] is (dout,).
    """
    offs, total_rows = _layer_row_offsets(layer_dims)
    slab = jnp.zeros((total_rows, LANE), jnp.float32)
    for i, (off, din, dout) in enumerate(
            zip(offs, layer_dims[:-1], layer_dims[1:]), start=1):
        slab = slab.at[off:off + din, :dout].set(params[f"w{i}"])
        slab = slab.at[off + din, :dout].set(params[f"b{i}"].reshape(dout))
    return slab.astype(dtype)


def _mlp_kernel(x_ref, w_ref, o_ref, *, layer_dims, row_offs, out_dim):
    """Whole forward pass for one batch tile; the weight slab is VMEM-resident."""
    wt = w_ref.dtype
    n_layers = len(layer_dims) - 1

    h = x_ref[...]                                    # (tile_b, input_dim)
    for li in range(n_layers):
        off, din = row_offs[li], layer_dims[li]
        # Layer 1 contracts over the raw input_dim; hidden activations are kept
        # lane-dense (128 wide, zero beyond dout) so matmul/bias/ReLU all work
        # on full unmasked vregs.
        k_rows = din if li == 0 else LANE
        acc = jnp.dot(h.astype(wt), w_ref[off:off + k_rows, :],
                      preferred_element_type=jnp.float32)
        acc = acc + w_ref[off + din:off + din + 1, :].astype(jnp.float32)
        if li == n_layers - 1:
            h = jax.nn.sigmoid(acc)
        else:
            h = jnp.maximum(acc, 0.0)                 # padded lanes stay exactly 0

    # Narrow HBM store: only out_dim lanes are written back.
    o_ref[...] = h[:, :out_dim].astype(o_ref.dtype)


def mlp_forward(x, w_slab, *, layer_dims, tile_b=None):
    """x: (B, input_dim) f32.  w_slab: packed params from pack_params()."""
    batch, input_dim = x.shape
    assert input_dim == layer_dims[0]
    out_dim = layer_dims[-1]
    row_offs, total_rows = _layer_row_offsets(layer_dims)

    # tile_b picks the grid-step count, not VMEM usage (the working set is tiny):
    # one step for small / Iris-scale batches; 2048-row tiles for large batches
    # (even step count -> both v7x TensorCores get work via 'parallel').
    if tile_b is None:
        tile_b = batch if batch <= 4096 else 2048
    tile_b = min(_round_up(tile_b, SUBLANE), _round_up(batch, SUBLANE))
    b_pad = _round_up(batch, tile_b)
    x_in = jnp.pad(x, ((0, b_pad - batch), (0, 0))) if b_pad > batch else x

    kernel = functools.partial(_mlp_kernel, layer_dims=layer_dims,
                               row_offs=row_offs, out_dim=out_dim)

    flops = 2 * batch * sum(a * b for a, b in zip(layer_dims[:-1], layer_dims[1:]))
    bytes_accessed = (x_in.size * x_in.dtype.itemsize
                      + w_slab.size * w_slab.dtype.itemsize
                      + b_pad * out_dim * 4)

    out = pl.pallas_call(
        kernel,
        out_shape=jax.ShapeDtypeStruct((b_pad, out_dim), jnp.float32),
        grid=(b_pad // tile_b,),
        in_specs=[
            # streamed batch tiles; last dim == full array dim (no feature pad)
            pl.BlockSpec((tile_b, input_dim), lambda i: (i, 0)),
            # packed weight slab: constant index_map -> DMA'd once, VMEM-resident
            pl.BlockSpec((total_rows, LANE), lambda i: (0, 0)),
        ],
        # narrow (out_dim-lane) output block -> minimal HBM writeback
        out_specs=pl.BlockSpec((tile_b, out_dim), lambda i: (i, 0)),
        compiler_params=pltpu.CompilerParams(
            dimension_semantics=("parallel",)),       # v7x: shard batch over 2 TCs
        cost_estimate=pl.CostEstimate(flops=flops,
                                      transcendentals=batch * out_dim,
                                      bytes_accessed=bytes_accessed),
    )(x_in, w_slab)

    return out[:batch] if b_pad > batch else out


def init_params(key, layer_dims):
    """Synthetic init matching nn.Linear scales; weights stored as (din, dout)."""
    params = {}
    for i, (din, dout) in enumerate(zip(layer_dims[:-1], layer_dims[1:]), start=1):
        key, kw, kb = jax.random.split(key, 3)
        bound = 1.0 / (din ** 0.5)                    # PyTorch default init scale
        params[f"w{i}"] = jax.random.uniform(kw, (din, dout), jnp.float32, -bound, bound)
        params[f"b{i}"] = jax.random.uniform(kb, (dout,), jnp.float32, -bound, bound)
    return params


def reference_forward(x, params):
    """Pure-JAX reference (f32 everywhere)."""
    h = jnp.maximum(x @ params["w1"] + params["b1"], 0.0)
    h = jnp.maximum(h @ params["w2"] + params["b2"], 0.0)
    h = jnp.maximum(h @ params["w3"] + params["b3"], 0.0)
    return jax.nn.sigmoid(h @ params["w4"] + params["b4"])


if __name__ == "__main__":
    key = jax.random.PRNGKey(0)
    kx, kp = jax.random.split(key)

    input_dim, output_dim, batch = 4, 3, 32           # Iris: 4 features -> 3 classes
    layer_dims = [input_dim, 64, 32, 16, output_dim]

    x = jax.random.normal(kx, (batch, input_dim), jnp.float32)
    params = init_params(kp, layer_dims)
    w_slab = pack_params(params, layer_dims, jnp.float32)

    out = jax.block_until_ready(mlp_forward(x, w_slab, layer_dims=layer_dims))
    ref = reference_forward(x, params)

    assert out.shape == (batch, output_dim), out.shape
    max_err = float(jnp.max(jnp.abs(out - ref)))
    assert jnp.allclose(out, ref, atol=1e-4, rtol=1e-4), max_err

    print("KERNEL_OK")
</pallas_src>

<mosaic_0001>
module attributes {stable_mosaic.version = 11 : i64} {
  func.func @_mlp_kernel(%arg0: i32, %arg1: memref<32x4xf32, #tpu.memory_space<vmem>>, %arg2: memref<392x128xf32, #tpu.memory_space<vmem>>, %arg3: memref<32x3xf32, #tpu.memory_space<vmem>>) attributes {dimension_semantics = [#tpu.dimension_semantics<parallel>], iteration_bounds = array<i64: 1>, scalar_prefetch = 0 : i64, scratch_operands = 0 : i64, tpu.core_type = #tpu.core_type<tc>, window_params = [{transform_indices = @transform_0, window_bounds = array<i64: 32, 4>}, {pipeline_mode = #tpu.pipeline_mode<synchronous>, transform_indices = @transform_1, window_bounds = array<i64: 392, 128>}, {transform_indices = @transform_2, window_bounds = array<i64: 32, 3>}]} {
    %c0 = arith.constant 0 : index
    %c0_0 = arith.constant 0 : index
    %0 = vector.load %arg1[%c0, %c0_0] : memref<32x4xf32, #tpu.memory_space<vmem>>, vector<32x4xf32>
    %c0_1 = arith.constant 0 : index
    %c0_2 = arith.constant 0 : index
    %1 = vector.load %arg2[%c0_1, %c0_2] : memref<392x128xf32, #tpu.memory_space<vmem>>, vector<4x128xf32>
    %cst = arith.constant dense<0.000000e+00> : vector<32x128xf32>
    %2 = tpu.matmul %0, %1, %cst {dimension_numbers = #tpu.dot_dimension_numbers<[1], [0], [0], [1], [0, 0, 1, 1], [], []>} : vector<32x4xf32>, vector<4x128xf32>, vector<32x128xf32> -> vector<32x128xf32>
    %c4 = arith.constant 4 : index
    %c0_3 = arith.constant 0 : index
    %3 = vector.load %arg2[%c4, %c0_3] : memref<392x128xf32, #tpu.memory_space<vmem>>, vector<1x128xf32>
    %4 = vector.broadcast %3 : vector<1x128xf32> to vector<32x128xf32>
    %5 = arith.addf %2, %4 : vector<32x128xf32>
    %cst_4 = arith.constant 0.000000e+00 : f32
    %6 = vector.broadcast %cst_4 : f32 to vector<32x128xf32>
    %7 = arith.maximumf %5, %6 : vector<32x128xf32>
    %c8 = arith.constant 8 : index
    %c0_5 = arith.constant 0 : index
    %8 = vector.load %arg2[%c8, %c0_5] : memref<392x128xf32, #tpu.memory_space<vmem>>, vector<128x128xf32>
    %cst_6 = arith.constant dense<0.000000e+00> : vector<32x128xf32>
    %9 = tpu.matmul %7, %8, %cst_6 {dimension_numbers = #tpu.dot_dimension_numbers<[1], [0], [0], [1], [0, 0, 1, 1], [], []>} : vector<32x128xf32>, vector<128x128xf32>, vector<32x128xf32> -> vector<32x128xf32>
    %c72 = arith.constant 72 : index
    %c0_7 = arith.constant 0 : index
    %10 = vector.load %arg2[%c72, %c0_7] : memref<392x128xf32, #tpu.memory_space<vmem>>, vector<1x128xf32>
    %11 = vector.broadcast %10 : vector<1x128xf32> to vector<32x128xf32>
    %12 = arith.addf %9, %11 : vector<32x128xf32>
    %cst_8 = arith.constant 0.000000e+00 : f32
    %13 = vector.broadcast %cst_8 : f32 to vector<32x128xf32>
    %14 = arith.maximumf %12, %13 : vector<32x128xf32>
    %c136 = arith.constant 136 : index
    %c0_9 = arith.constant 0 : index
    %15 = vector.load %arg2[%c136, %c0_9] : memref<392x128xf32, #tpu.memory_space<vmem>>, vector<128x128xf32>
    %cst_10 = arith.constant dense<0.000000e+00> : vector<32x128xf32>
    %16 = tpu.matmul %14, %15, %cst_10 {dimension_numbers = #tpu.dot_dimension_numbers<[1], [0], [0], [1], [0, 0, 1, 1], [], []>} : vector<32x128xf32>, vector<128x128xf32>, vector<32x128xf32> -> vector<32x128xf32>
    %c168 = arith.constant 168 : index
    %c0_11 = arith.constant 0 : index
    %17 = vector.load %arg2[%c168, %c0_11] : memref<392x128xf32, #tpu.memory_space<vmem>>, vector<1x128xf32>
    %18 = vector.broadcast %17 : vector<1x128xf32> to vector<32x128xf32>
    %19 = arith.addf %16, %18 : vector<32x128xf32>
    %cst_12 = arith.constant 0.000000e+00 : f32
    %20 = vector.broadcast %cst_12 : f32 to vector<32x128xf32>
    %21 = arith.maximumf %19, %20 : vector<32x128xf32>
    %c264 = arith.constant 264 : index
    %c0_13 = arith.constant 0 : index
    %22 = vector.load %arg2[%c264, %c0_13] : memref<392x128xf32, #tpu.memory_space<vmem>>, vector<128x128xf32>
    %cst_14 = arith.constant dense<0.000000e+00> : vector<32x128xf32>
    %23 = tpu.matmul %21, %22, %cst_14 {dimension_numbers = #tpu.dot_dimension_numbers<[1], [0], [0], [1], [0, 0, 1, 1], [], []>} : vector<32x128xf32>, vector<128x128xf32>, vector<32x128xf32> -> vector<32x128xf32>
    %c280 = arith.constant 280 : index
    %c0_15 = arith.constant 0 : index
    %24 = vector.load %arg2[%c280, %c0_15] : memref<392x128xf32, #tpu.memory_space<vmem>>, vector<1x128xf32>
    %25 = vector.broadcast %24 : vector<1x128xf32> to vector<32x128xf32>
    %26 = arith.addf %23, %25 : vector<32x128xf32>
    %27 = arith.negf %26 : vector<32x128xf32>
    %28 = math.exp %27 : vector<32x128xf32>
    %cst_16 = arith.constant 1.000000e+00 : f32
    %29 = vector.broadcast %cst_16 : f32 to vector<32x128xf32>
    %30 = arith.addf %29, %28 : vector<32x128xf32>
    %31 = arith.divf %29, %30 : vector<32x128xf32>
    %32 = vector.extract_strided_slice %31 {offsets = [0, 0], sizes = [32, 3], strides = [1, 1]} : vector<32x128xf32> to vector<32x3xf32>
    %c0_17 = arith.constant 0 : index
    %c0_18 = arith.constant 0 : index
    %33 = vector.load %arg3[%c0_17, %c0_18] : memref<32x3xf32, #tpu.memory_space<vmem>>, vector<32x3xf32>
    tpu.vector_store %arg3[%c0_17, %c0_18], %32 {strides = array<i32>} : memref<32x3xf32, #tpu.memory_space<vmem>>, vector<32x3xf32>,
    return
  }
  func.func @transform_0(%arg0: i32) -> (i32, i32) {
    %c0_i32 = arith.constant 0 : i32
    %c0_i32_0 = arith.constant 0 : i32
    return %arg0, %c0_i32 : i32, i32
  }
  func.func @transform_1(%arg0: i32) -> (i32, i32) {
    %c0_i32 = arith.constant 0 : i32
    %c0_i32_0 = arith.constant 0 : i32
    %c0_i32_1 = arith.constant 0 : i32
    return %c0_i32, %c0_i32_0 : i32, i32
  }
  func.func @transform_2(%arg0: i32) -> (i32, i32) {
    %c0_i32 = arith.constant 0 : i32
    %c0_i32_0 = arith.constant 0 : i32
    return %arg0, %c0_i32 : i32, i32
  }
}

</mosaic_0001>

<bundles_post_ra>
// kernel: tpu_custom_call.1
= control target key start
LH: loop header
LB: loop body
LE: loop exit
PB: predicated region body
PF: predicated region fallthrough
CT: control target
= control target key end

     0   :  { %7 = vsyncpa [#allocation3], 0  ;;  %s774_s9 = smov [#allocation2]   ;;  %s823_s0 = inlined_call_operand.vmem [shape: f32[32,4], index: 0, kind: input, shape index: {}]   ;;  %s824_s1 = inlined_call_operand.hbm [shape: f32[392,128], index: 1, kind: input, shape index: {}]   ;;  %s825_s2 = inlined_call_operand.vmem [shape: f32[32,3], index: 2, kind: output, shape index: {}]  }
   0x1   :  { %s15_s10 = sshll.u32 %s774_s9, 4  ;;  %s16_s10 = int_to_ptr.vmem [resolvable:$true] %s15_s10 }
   0x2   :  { %s760_s11 = scalar_lea.vmem %s16_s10, 6272  ;;  %p765_p1 = scmp.lt.s32.totalorder %s16_s10, %s16_s10 }
   0x3   :  { %p761_p0 = scmp.ne.s32.totalorder %s16_s10, %s760_s11  ;;  %p766_p2 = scmp.lt.s32.totalorder %s760_s11, %s760_s11 }
   0x5   :  { %p767_p3 = por %p766_p2, %p765_p1 }
   0x7   :  { %p768_p4 = pnand %p767_p3, %p761_p0 }
   0x9   :  { %771 = shalt.err (!%p768_p4)
}
   0xa   :  { %s775_s12 = smov 128   ;;  %s776_s13 = smov 8  }
   0xb   :  { %21 = dma.hbm_to_vmem [thread:$0]  %s824_s1, 6272, %s16_s10, [#allocation3], %s775_s12, %s775_s12, %s776_s13  }
   0xc   :  { %772 = dma.done.wait [#allocation3], 6272  }
   0xd   :  { %773 = vsyncadd [#allocation3], 4294961024  ;;  %vm48_vm0 = vcmask 1043456   ;;  %vm35_vm1 = vcmask 31744   ;;  %v29_v0 = vld [vmem:[#allocation2] sm:$0xf] }
   0xe   :  { %v25_v1 = vld [vmem:[%s823_s0] sm:$0xff]  ;;  %v26_v2 = vld [vmem:[%s823_s0 + $0x8] sm:$0xff]  ;;  %579 = vmatprep.subr.msk.mxu0 %vm48_vm0, %v29_v0  ;;  %v27_v3 = vld [vmem:[%s823_s0 + $0x10] sm:$0xff]  ;;  %vm491_vm2 = vcmask 23552  }
   0xf   :  { %581 = vmatprep.mubr.msk.f32.mxu0 %vm35_vm1, %v25_v1  ;;  %v156_v4 = vld [vmem:[#allocation2 + $0x80] sm:$0xff]  ;;  %580 = vmatpush3.msk.msra.mxu0 %vm48_vm0, %v29_v0  ;;  %v155_v5 = vld [vmem:[#allocation2 + $0x78] sm:$0xff]  ;;  %v154_v6 = vld [vmem:[#allocation2 + $0x70] sm:$0xff] }
  0x10   :  { %587 = vmatprep.subr.mxu1 %v156_v4  ;;  %582 = vmatmul.mubr.msk.f32.vlgmr.msra.gmra.mxu0 %vm35_vm1, %v26_v2  ;;  %v28_v7 = vld [vmem:[%s823_s0 + $0x18] sm:$0xff]  ;;  %v153_v8 = vld [vmem:[#allocation2 + $0x68] sm:$0xff]  ;;  %v152_v9 = vld [vmem:[#allocation2 + $0x60] sm:$0xff] }
  0x11   :  { %588 = vmatpush3.msra.mxu1 %v156_v4  ;;  %584 = vmatprep.mubr.msk.f32.mxu0 %vm35_vm1, %v27_v3  ;;  %v151_v10 = vld [vmem:[#allocation2 + $0x58] sm:$0xff]  ;;  %v150_v11 = vld [vmem:[#allocation2 + $0x50] sm:$0xff]  ;;  %v149_v12 = vld [vmem:[#allocation2 + $0x48] sm:$0xff] }
  0x12   :  { %589 = vmatprep.subr.mxu1 %v155_v5  ;;  %v148_v13 = vld [vmem:[#allocation2 + $0x40] sm:$0xff]  ;;  %v147_v14 = vld [vmem:[#allocation2 + $0x38] sm:$0xff]  ;;  %v146_v15 = vld [vmem:[#allocation2 + $0x30] sm:$0xff] }
  0x13   :  { %590 = vmatpush3.msra.mxu1 %v155_v5  ;;  %v145_v16 = vld [vmem:[#allocation2 + $0x28] sm:$0xff]  ;;  %v144_v17 = vld [vmem:[#allocation2 + $0x20] sm:$0xff]  ;;  %v143_v18 = vld [vmem:[#allocation2 + $0x18] sm:$0xff] }
  0x14   :  { %591 = vmatprep.subr.mxu1 %v154_v6  ;;  %585 = vmatmul.mubr.msk.f32.gmra.mxu0 %vm35_vm1, %v28_v7  ;;  %v142_v19 = vld [vmem:[#allocation2 + $0x10] sm:$0xff]  ;;  %v141_v20 = vld [vmem:[#allocation2 + $0x8] sm:$0xff]  ;;  %v266_v21 = vld [vmem:[#allocation2 + $0x100] sm:$0xff] }
  0x15   :  { %592 = vmatpush3.msra.mxu1 %v154_v6  ;;  %v265_v22 = vld [vmem:[#allocation2 + $0xf8] sm:$0xff]  ;;  %625 = vmatprep.subr.mxu0 %v266_v21  ;;  %v264_v23 = vld [vmem:[#allocation2 + $0xf0] sm:$0xff]  ;;  %v263_v24 = vld [vmem:[#allocation2 + $0xe8] sm:$0xff] }
  0x16   :  { %593 = vmatprep.subr.mxu1 %v153_v8  ;;  %626 = vmatpush3.msra.mxu0 %v266_v21  ;;  %v262_v25 = vld [vmem:[#allocation2 + $0xe0] sm:$0xff]  ;;  %v261_v26 = vld [vmem:[#allocation2 + $0xd8] sm:$0xff]  ;;  %v260_v27 = vld [vmem:[#allocation2 + $0xd0] sm:$0xff] }
  0x17   :  { %594 = vmatpush3.msra.mxu1 %v153_v8  ;;  %627 = vmatprep.subr.mxu0 %v265_v22  ;;  %v259_v28 = vld [vmem:[#allocation2 + $0xc8] sm:$0xff]  ;;  %v258_v29 = vld [vmem:[#allocation2 + $0xc0] sm:$0xff]  ;;  %v257_v30 = vld [vmem:[#allocation2 + $0xb8] sm:$0xff] }
  0x18   :  { %595 = vmatprep.subr.mxu1 %v152_v9  ;;  %628 = vmatpush3.msra.mxu0 %v265_v22  ;;  %v256_v31 = vld [vmem:[#allocation2 + $0xb0] sm:$0xff]  ;;  %v255_v32 = vld [vmem:[#allocation2 + $0xa8] sm:$0xff]  ;;  %v501_v33 = vld [vmem:[#allocation2 + $0x4] ss:$0 sm:$0xff] }
  0x19   :  { %596 = vmatpush3.msra.mxu1 %v152_v9  ;;  %629 = vmatprep.subr.mxu0 %v264_v23  ;;  %v254_v46 = vld [vmem:[#allocation2 + $0xa0] sm:$0xff]  ;;  %v253_v47 = vld [vmem:[#allocation2 + $0x98] sm:$0xff]  ;;  %v252_v48 = vld [vmem:[#allocation2 + $0x90] sm:$0xff] }
  0x1a   :  { %597 = vmatprep.subr.mxu1 %v151_v10  ;;  %630 = vmatpush3.msra.mxu0 %v264_v23  ;;  %v251_v49 = vld [vmem:[#allocation2 + $0x88] sm:$0xff]  ;;  %v376_v50 = vld [vmem:[#allocation2 + $0x180] sm:$0xff]  ;;  %v375_v51 = vld [vmem:[#allocation2 + $0x178] sm:$0xff] }
  0x1b   :  { %598 = vmatpush3.msra.mxu1 %v151_v10  ;;  %631 = vmatprep.subr.mxu0 %v263_v24  ;;  %v374_v52 = vld [vmem:[#allocation2 + $0x170] sm:$0xff]  ;;  %v373_v53 = vld [vmem:[#allocation2 + $0x168] sm:$0xff]  ;;  %v372_v54 = vld [vmem:[#allocation2 + $0x160] sm:$0xff] }
  0x1c   :  { %599 = vmatprep.subr.mxu1 %v150_v11  ;;  %632 = vmatpush3.msra.mxu0 %v263_v24  ;;  %v371_v55 = vld [vmem:[#allocation2 + $0x158] sm:$0xff]  ;;  %v370_v56 = vld [vmem:[#allocation2 + $0x150] sm:$0xff]  ;;  %v369_v57 = vld [vmem:[#allocation2 + $0x148] sm:$0xff] }
  0x1d   :  { %600 = vmatpush3.msra.mxu1 %v150_v11  ;;  %633 = vmatprep.subr.mxu0 %v262_v25  ;;  %v368_v58 = vld [vmem:[#allocation2 + $0x140] sm:$0xff]  ;;  %v367_v59 = vld [vmem:[#allocation2 + $0x138] sm:$0xff]  ;;  %v366_v60 = vld [vmem:[#allocation2 + $0x130] sm:$0xff] }
  0x1e   :  { %601 = vmatprep.subr.mxu1 %v149_v12  ;;  %634 = vmatpush3.msra.mxu0 %v262_v25  ;;  %v365_v61 = vld [vmem:[#allocation2 + $0x128] sm:$0xff]  ;;  %v364_v11 = vld [vmem:[#allocation2 + $0x120] sm:$0xff] }
  0x1f   :  { %602 = vmatpush3.msra.mxu1 %v149_v12  ;;  %635 = vmatprep.subr.mxu0 %v261_v26  ;;  %v507_v62 = vld [vmem:[#allocation2 + $0x48] ss:$0 sm:$0xff]  ;;  %v363_v12 = vld [vmem:[#allocation2 + $0x118] sm:$0xff] }
  0x20   :  { %603 = vmatprep.subr.mxu1 %v148_v13  ;;  %636 = vmatpush3.msra.mxu0 %v261_v26 }
  0x21   :  { %604 = vmatpush3.msra.mxu1 %v148_v13  ;;  %637 = vmatprep.subr.mxu0 %v260_v27  ;;  %v362_v13 = vld [vmem:[#allocation2 + $0x110] sm:$0xff] }
  0x22   :  { %605 = vmatprep.subr.mxu1 %v147_v14  ;;  %638 = vmatpush3.msra.mxu0 %v260_v27 }
  0x23   :  { %606 = vmatpush3.msra.mxu1 %v147_v14  ;;  %639 = vmatprep.subr.mxu0 %v259_v28  ;;  %v361_v14 = vld [vmem:[#allocation2 + $0x108] sm:$0xff] }
  0x24   :  { %607 = vmatprep.subr.mxu1 %v146_v15  ;;  %640 = vmatpush3.msra.mxu0 %v259_v28  ;;  %v509_v28 = vld [vmem:[#allocation2 + $0x118] ss:$0 sm:$0xff] }
  0x25   :  { %608 = vmatpush3.msra.mxu1 %v146_v15  ;;  %641 = vmatprep.subr.mxu0 %v258_v29  ;;  %v508_v15 = vld [vmem:[#allocation2 + $0xa8] ss:$0 sm:$0xff] }
  0x26   :  { %609 = vmatprep.subr.mxu1 %v145_v16  ;;  %642 = vmatpush3.msra.mxu0 %v258_v29 }
  0x27   :  { %610 = vmatpush3.msra.mxu1 %v145_v16  ;;  %643 = vmatprep.subr.mxu0 %v257_v30 }
  0x28   :  { %611 = vmatprep.subr.mxu1 %v144_v17  ;;  %644 = vmatpush3.msra.mxu0 %v257_v30 }
  0x29   :  { %612 = vmatpush3.msra.mxu1 %v144_v17  ;;  %645 = vmatprep.subr.mxu0 %v256_v31 }
  0x2a   :  { %613 = vmatprep.subr.mxu1 %v143_v18  ;;  %646 = vmatpush3.msra.mxu0 %v256_v31 }
  0x2b   :  { %614 = vmatpush3.msra.mxu1 %v143_v18  ;;  %647 = vmatprep.subr.mxu0 %v255_v32 }
  0x2c   :  { %615 = vmatprep.subr.mxu1 %v142_v19  ;;  %648 = vmatpush3.msra.mxu0 %v255_v32 }
  0x2d   :  { %616 = vmatpush3.msra.mxu1 %v142_v19  ;;  %649 = vmatprep.subr.mxu0 %v254_v46 }
  0x2e   :  { %617 = vmatprep.subr.mxu1 %v141_v20  ;;  %650 = vmatpush3.msra.mxu0 %v254_v46 }
  0x2f   :  { %618 = vmatpush3.msra.mxu1 %v141_v20  ;;  %651 = vmatprep.subr.mxu0 %v253_v47 }
  0x30   :  { %652 = vmatpush3.msra.mxu0 %v253_v47  ;;  %701 = vmatprep.subr.mxu1 %v376_v50 }
  0x31   :  { %653 = vmatprep.subr.mxu0 %v252_v48 }
  0x32   :  { %654 = vmatpush3.msra.mxu0 %v252_v48 }
  0x33   :  { %655 = vmatprep.subr.mxu0 %v251_v49 }
  0x34   :  { %656 = vmatpush3.msra.mxu0 %v251_v49 }
  0x35   :  { %663 = vmatprep.subr.mxu0 %v376_v50 }
  0xd0   :  { %v583_v34 = vpop.f32.mrf.mxu0 }
  0xd1   :  { %v124_v35 = vadd.f32 %v583_v34, %v501_v33 }
  0xd2   :  { %v118_v36 = vpop.f32.mrf.mxu0 }
  0xd3   :  { %v119_v37 = vadd.f32 %v501_v33, %v118_v36  ;;  %v138_v40 = vmax.f32 %v124_v35, 0.0 }
  0xd4   :  { %v586_v38 = vpop.f32.mrf.mxu0 }
  0xd5   :  { %v137_v39 = vmax.f32 %v119_v37, 0.0  ;;  %v134_v41 = vadd.f32 %v586_v38, %v501_v33 }
  0xd6   :  { %v128_v42 = vpop.f32.mrf.mxu0 }
  0xd7   :  { %v129_v43 = vadd.f32 %v501_v33, %v128_v42  ;;  %619 = vmatprep.mubr.f32.mxu1 %v137_v39  ;;  %v140_v45 = vmax.f32 %v134_v41, 0.0 }
  0xd8   :  { %620 = vmatmul.mubr.f32.vlgmr.msra.gmra.mxu1 %v138_v40 }
  0xd9   :  { %v139_v44 = vmax.f32 %v129_v43, 0.0  ;;  %717 = vmatpush3.msra.mxu1 %v376_v50 }
  0xda   :  { %702 = vmatprep.subr.mxu1 %v375_v51 }
  0xdb   :  { %622 = vmatprep.mubr.f32.mxu1 %v139_v44  ;;  %718 = vmatpush3.msra.mxu1 %v375_v51 }
  0xdc   :  { %623 = vmatmul.mubr.f32.gmra.mxu1 %v140_v45  ;;  %703 = vmatprep.subr.mxu1 %v374_v52 }
  0xdd   :  { %719 = vmatpush3.msra.mxu1 %v374_v52 }
  0xde   :  { %704 = vmatprep.subr.mxu1 %v373_v53 }
  0xdf   :  { %720 = vmatpush3.msra.mxu1 %v373_v53 }
  0xe0   :  { %705 = vmatprep.subr.mxu1 %v372_v54 }
  0xe1   :  { %721 = vmatpush3.msra.mxu1 %v372_v54 }
  0xe2   :  { %706 = vmatprep.subr.mxu1 %v371_v55 }
  0xe3   :  { %722 = vmatpush3.msra.mxu1 %v371_v55 }
  0xe4   :  { %707 = vmatprep.subr.mxu1 %v370_v56 }
  0xe5   :  { %723 = vmatpush3.msra.mxu1 %v370_v56 }
  0xe6   :  { %708 = vmatprep.subr.mxu1 %v369_v57 }
  0xe7   :  { %724 = vmatpush3.msra.mxu1 %v369_v57 }
  0xe8   :  { %709 = vmatprep.subr.mxu1 %v368_v58 }
  0xe9   :  { %725 = vmatpush3.msra.mxu1 %v368_v58 }
  0xea   :  { %710 = vmatprep.subr.mxu1 %v367_v59 }
  0xeb   :  { %726 = vmatpush3.msra.mxu1 %v367_v59 }
  0xec   :  { %711 = vmatprep.subr.mxu1 %v366_v60 }
  0xed   :  { %727 = vmatpush3.msra.mxu1 %v366_v60 }
  0xee   :  { %712 = vmatprep.subr.mxu1 %v365_v61 }
  0xef   :  { %728 = vmatpush3.msra.mxu1 %v365_v61 }
  0xf0   :  { %713 = vmatprep.subr.mxu1 %v364_v11 }
  0xf1   :  { %729 = vmatpush3.msra.mxu1 %v364_v11 }
  0xf2   :  { %714 = vmatprep.subr.mxu1 %v363_v12 }
  0xf3   :  { %730 = vmatpush3.msra.mxu1 %v363_v12 }
  0xf4   :  { %715 = vmatprep.subr.mxu1 %v362_v13 }
  0xf5   :  { %731 = vmatpush3.msra.mxu1 %v362_v13 }
  0xf6   :  { %716 = vmatprep.subr.mxu1 %v361_v14 }
  0xf7   :  { %732 = vmatpush3.msra.mxu1 %v361_v14 }
 0x198   :  { %v621_v63 = vpop.f32.mrf.mxu1 }
 0x199   :  { %v234_v0 = vadd.f32 %v621_v63, %v507_v62 }
 0x19a   :  { %v228_v1 = vpop.f32.mrf.mxu1 }
 0x19b   :  { %v229_v2 = vadd.f32 %v507_v62, %v228_v1  ;;  %v248_v5 = vmax.f32 %v234_v0, 0.0 }
 0x19c   :  { %v624_v3 = vpop.f32.mrf.mxu1 }
 0x19d   :  { %v247_v4 = vmax.f32 %v229_v2, 0.0  ;;  %v244_v6 = vadd.f32 %v624_v3, %v507_v62 }
 0x19e   :  { %v238_v7 = vpop.f32.mrf.mxu1 }
 0x19f   :  { %v239_v8 = vadd.f32 %v507_v62, %v238_v7  ;;  %657 = vmatprep.mubr.f32.mxu0 %v247_v4  ;;  %v250_v10 = vmax.f32 %v244_v6, 0.0 }
 0x1a0   :  { %658 = vmatmul.mubr.f32.vlgmr.msra.gmra.mxu0 %v248_v5 }
 0x1a1   :  { %v249_v9 = vmax.f32 %v239_v8, 0.0  ;;  %664 = vmatpush3.msra.mxu0 %v376_v50 }
 0x1a2   :  { %665 = vmatprep.subr.mxu0 %v375_v51 }
 0x1a3   :  { %660 = vmatprep.mubr.f32.mxu0 %v249_v9  ;;  %666 = vmatpush3.msra.mxu0 %v375_v51 }
 0x1a4   :  { %661 = vmatmul.mubr.f32.gmra.mxu0 %v250_v10  ;;  %667 = vmatprep.subr.mxu0 %v374_v52 }
 0x1a5   :  { %668 = vmatpush3.msra.mxu0 %v374_v52 }
 0x1a6   :  { %669 = vmatprep.subr.mxu0 %v373_v53 }
 0x1a7   :  { %670 = vmatpush3.msra.mxu0 %v373_v53 }
 0x1a8   :  { %671 = vmatprep.subr.mxu0 %v372_v54 }
 0x1a9   :  { %672 = vmatpush3.msra.mxu0 %v372_v54 }
 0x1aa   :  { %673 = vmatprep.subr.mxu0 %v371_v55 }
 0x1ab   :  { %674 = vmatpush3.msra.mxu0 %v371_v55 }
 0x1ac   :  { %675 = vmatprep.subr.mxu0 %v370_v56 }
 0x1ad   :  { %676 = vmatpush3.msra.mxu0 %v370_v56 }
 0x1ae   :  { %677 = vmatprep.subr.mxu0 %v369_v57 }
 0x1af   :  { %678 = vmatpush3.msra.mxu0 %v369_v57 }
 0x1b0   :  { %679 = vmatprep.subr.mxu0 %v368_v58 }
 0x1b1   :  { %680 = vmatpush3.msra.mxu0 %v368_v58 }
 0x1b2   :  { %681 = vmatprep.subr.mxu0 %v367_v59 }
 0x1b3   :  { %682 = vmatpush3.msra.mxu0 %v367_v59 }
 0x1b4   :  { %683 = vmatprep.subr.mxu0 %v366_v60 }
 0x1b5   :  { %684 = vmatpush3.msra.mxu0 %v366_v60 }
 0x1b6   :  { %685 = vmatprep.subr.mxu0 %v365_v61 }
 0x1b7   :  { %686 = vmatpush3.msra.mxu0 %v365_v61 }
 0x1b8   :  { %687 = vmatprep.subr.mxu0 %v364_v11 }
 0x1b9   :  { %688 = vmatpush3.msra.mxu0 %v364_v11 }
 0x1ba   :  { %689 = vmatprep.subr.mxu0 %v363_v12 }
 0x1bb   :  { %690 = vmatpush3.msra.mxu0 %v363_v12 }
 0x1bc   :  { %691 = vmatprep.subr.mxu0 %v362_v13 }
 0x1bd   :  { %692 = vmatpush3.msra.mxu0 %v362_v13 }
 0x1be   :  { %693 = vmatprep.subr.mxu0 %v361_v14 }
 0x1bf   :  { %694 = vmatpush3.msra.mxu0 %v361_v14 }
 0x260   :  { %v659_v16 = vpop.f32.mrf.mxu0 }
 0x261   :  { %v344_v17 = vadd.f32 %v659_v16, %v508_v15 }
 0x262   :  { %v338_v18 = vpop.f32.mrf.mxu0 }
 0x263   :  { %v339_v19 = vadd.f32 %v508_v15, %v338_v18  ;;  %v358_v22 = vmax.f32 %v344_v17, 0.0 }
 0x264   :  { %v662_v20 = vpop.f32.mrf.mxu0 }
 0x265   :  { %v357_v21 = vmax.f32 %v339_v19, 0.0  ;;  %v354_v23 = vadd.f32 %v662_v20, %v508_v15 }
 0x266   :  { %v348_v24 = vpop.f32.mrf.mxu0 }
 0x267   :  { %v349_v25 = vadd.f32 %v508_v15, %v348_v24  ;;  %695 = vmatprep.mubr.f32.mxu0 %v357_v21  ;;  %v360_v27 = vmax.f32 %v354_v23, 0.0 }
 0x268   :  { %696 = vmatmul.mubr.f32.vlgmr.msra.gmra.mxu0 %v358_v22 }
 0x269   :  { %v359_v26 = vmax.f32 %v349_v25, 0.0 }
 0x26b   :  { %698 = vmatprep.mubr.f32.mxu1 %v359_v26 }
 0x26c   :  { %699 = vmatmul.mubr.f32.vlgmr.msra.gmra.mxu1 %v360_v27 }
 0x328   :  { %v697_v29 = vpop.f32.mrf.mxu0 }
 0x329   :  { %v454_v30 = vadd.f32 %v697_v29, %v509_v28 }
 0x32a   :  { %v448_v31 = vpop.f32.mrf.mxu0 }
 0x32b   :  { %v511_v32 = vmul.f32 -1.442695, %v454_v30  ;;  %v449_v33 = vadd.f32 %v509_v28, %v448_v31 }
 0x32c   :  { %v700_v34 = vpop.f32.mrf.mxu1 }
 0x32d   :  { %736 = vpow2.f32 %v511_v32  ;;  %v510_v35 = vmul.f32 -1.442695, %v449_v33  ;;  %v464_v36 = vadd.f32 %v700_v34, %v509_v28 }
 0x32e   :  { %v458_v37 = vpop.f32.mrf.mxu1 }
 0x32f   :  { %738 = vpow2.f32 %v510_v35  ;;  %v513_v38 = vmul.f32 -1.442695, %v464_v36  ;;  %v459_v39 = vadd.f32 %v509_v28, %v458_v37 }
 0x331   :  { %740 = vpow2.f32 %v513_v38  ;;  %v512_v40 = vmul.f32 -1.442695, %v459_v39 }
 0x333   :  { %742 = vpow2.f32 %v512_v40 }
 0x33a   :  { %v737_v41 = vpop.eup %736 }
 0x33b   :  { %v480_v42 = vadd.f32 1.0, %v737_v41 }
 0x33c   :  { %v739_v43 = vpop.eup %738 }
 0x33d   :  { %744 = vrcp.f32 %v480_v42  ;;  %v479_v44 = vadd.f32 1.0, %v739_v43 }
 0x33e   :  { %v741_v45 = vpop.eup %740 }
 0x33f   :  { %746 = vrcp.f32 %v479_v44  ;;  %v482_v46 = vadd.f32 1.0, %v741_v45 }
 0x340   :  { %v743_v47 = vpop.eup %742 }
 0x341   :  { %748 = vrcp.f32 %v482_v46  ;;  %v481_v48 = vadd.f32 1.0, %v743_v47 }
 0x343   :  { %750 = vrcp.f32 %v481_v48 }
 0x34a   :  { %v745_v49 = vpop.eup %744 }
 0x34b   :  { %493 = vst.msk [vmem:[%s825_s2 + $0x8] sm:$0xff] %vm491_vm2, %v745_v49 }
 0x34c   :  { %v747_v50 = vpop.eup %746 }
 0x34d   :  { %492 = vst.msk [vmem:[%s825_s2] sm:$0xff] %vm491_vm2, %v747_v50 }
 0x34e   :  { %v749_v51 = vpop.eup %748 }
 0x34f   :  { %495 = vst.msk [vmem:[%s825_s2 + $0x18] sm:$0xff] %vm491_vm2, %v749_v51 }
 0x350   :  { %v751_v52 = vpop.eup %750 }
 0x351   :  { %494 = vst.msk [vmem:[%s825_s2 + $0x10] sm:$0xff] %vm491_vm2, %v751_v52 }
 0x352   :  { %500 = vsyncpa [#allocation3], 1 }

</bundles_post_ra>
